<compile_context>
chip_gen: v7x
topology: tpu7x:2x2x1
jax: 0.10.0
libtpu: 0.0.40
codegen_flags: <defaults>
</compile_context>

<pallas_src>
import functools

import jax
import jax.numpy as jnp
from jax.experimental import pallas as pl
from jax.experimental.pallas import tpu as pltpu


def _round_up(x, m):
    return ((x + m - 1) // m) * m


# ---------------------------------------------------------------------------
# Kernels
# ---------------------------------------------------------------------------
def _linear_kernel(x_ref, wt_ref, b_ref, o_ref):
    """y = x @ W^T + b for one (tB, F) x (F, tN) tile pair.

    Single MXU matmul with f32 accumulation + VPU bias add.  The x tile is
    cast to the weight dtype (no-op for f32, bf16 on the bf16 path) so the
    MXU sees matching operands; the bias add stays f32 (v5e has no bf16 VPU).
    """
    acc = jnp.dot(x_ref[...].astype(wt_ref.dtype), wt_ref[...],
                  preferred_element_type=jnp.float32)
    o_ref[...] = (acc + b_ref[...]).astype(o_ref.dtype)


def _linear_kernel_ktiled(x_ref, wt_ref, b_ref, o_ref, acc_ref):
    """Feature(K)-tiled variant: accumulate partial products over the last
    ("arbitrary") grid axis in an f32 VMEM scratch; add bias on the final step."""
    k = pl.program_id(2)

    @pl.when(k == 0)
    def _init():
        acc_ref[...] = jnp.zeros_like(acc_ref)

    acc_ref[...] += jnp.dot(x_ref[...].astype(wt_ref.dtype), wt_ref[...],
                            preferred_element_type=jnp.float32)

    @pl.when(k == pl.num_programs(2) - 1)
    def _finalize():
        o_ref[...] = (acc_ref[...] + b_ref[...]).astype(o_ref.dtype)


# ---------------------------------------------------------------------------
# One-time parameter prep (model-load time, not per forward)
# ---------------------------------------------------------------------------
def prepare_params(weight, bias, compute_dtype=jnp.float32):
    """weight: [C, F] (PyTorch nn.Linear layout), bias: [C].

    Returns (wt_pad [F, C_pad], bias_pad [1, C_pad] f32, C) with C_pad a
    multiple of 128 so in-kernel stores are lane-dense.  compute_dtype=bf16
    stores the weight in bfloat16 (v6e/v7x bandwidth/VMEM/MXU lever);
    accumulation and the bias add remain f32 in-kernel.
    """
    C, F = weight.shape
    C_pad = max(128, _round_up(C, 128))
    wt_pad = jnp.zeros((F, C_pad), compute_dtype).at[:, :C].set(
        weight.T.astype(compute_dtype))
    bias_pad = jnp.zeros((1, C_pad), jnp.float32).at[0, :C].set(
        bias.astype(jnp.float32))
    return wt_pad, bias_pad, C


# ---------------------------------------------------------------------------
# VMEM planning
# ---------------------------------------------------------------------------
def _vmem_limit_and_budget():
    """Generation-aware scoped-VMEM limit + tile-planning budget.

    v5e/v6e (128 MiB physical VMEM) -> ~96 MiB limit; v7x (64 MiB per
    TensorCore) -> 48 MiB.  The planning budget keeps ~15% headroom for
    compiler scratch / semaphores.
    """
    try:
        cap = int(pltpu.get_tpu_info().vmem_capacity_bytes)
    except Exception:
        cap = 64 * 1024 * 1024          # conservative fallback if query fails
    limit = (cap * 3) // 4
    return limit, int(limit * 0.85)


@functools.cache
def _single_buffering_supported():
    """Probe once whether this jax/Mosaic build accepts pl.Buffered(1) specs
    for grid-invariant inputs; if not, fall back to default double buffering."""
    def _copy(x_ref, o_ref):
        o_ref[...] = x_ref[...]

    try:
        pl.pallas_call(
            _copy,
            out_shape=jax.ShapeDtypeStruct((16, 128), jnp.float32),
            grid=(2,),
            in_specs=[pl.BlockSpec((8, 128), lambda i: (0, 0),
                                   pipeline_mode=pl.Buffered(1))],
            out_specs=pl.BlockSpec((8, 128), lambda i: (i, 0)),
        )(jnp.zeros((8, 128), jnp.float32))
        return True
    except Exception:
        return False


def _choose_tiles(B, F, C_pad, x_bytes, w_bytes, budget):
    """Pick (tB, tN, tK) against a VMEM budget.

    Preference order:
      1. whole padded weight resident (tN=C_pad, tK=F), single-buffered;
      2. class (N) tiling with the feature dim unsplit (tK=F);
      3. feature (K) reduction tiling with an f32 accumulator (very large F).
    x / out / streamed-weight tiles are budgeted double-buffered; the
    grid-invariant resident weight is budgeted once.
    """
    out_bytes = 4                       # f32 logits / accumulator
    sub = 8 if x_bytes >= 4 else 16     # sublane multiple for packed dtypes

    def pick_tb(fixed, per_row):
        avail = budget - fixed
        if avail < sub * per_row:
            return None
        tb = min(avail // per_row, 2048)
        # Keep >= ~4 grid steps on large batches so both v7x TensorCores get
        # work and x/out DMAs pipeline against compute (~0.35us/step overhead
        # is negligible at 256+ row tiles).
        if B >= 4 * 256:
            tb = min(tb, max(256, _round_up(-(-B // 4), sub)))
        if tb >= B:
            return B                    # one full-extent batch block
        tb = (tb // sub) * sub
        return tb if tb >= sub else None

    # 1) fully resident weight + bias (index_map constant -> single buffer).
    fixed = F * C_pad * w_bytes + C_pad * out_bytes
    per_row = 2 * (F * x_bytes + C_pad * out_bytes)
    tb = pick_tb(fixed, per_row)
    if tb is not None:
        return tb, C_pad, F

    # 2) stream weight column blocks (double-buffered), features unsplit.
    tn = C_pad
    while tn > 128 and 2 * tn * (F * w_bytes + out_bytes) > budget // 2:
        tn = max(128, _round_up(tn // 2, 128))
    fixed = 2 * tn * (F * w_bytes + out_bytes)
    per_row = 2 * (F * x_bytes + tn * out_bytes)
    tb = pick_tb(fixed, per_row)
    if tb is not None:
        return tb, tn, F

    # 3) last resort: also tile the contraction (feature) dim.
    tn = 128
    tb = B if B <= 512 else 512
    fixed = 3 * tb * tn * out_bytes + 2 * tn * out_bytes   # out(x2) + acc + bias(x2)
    per_k = 2 * (tb * x_bytes + tn * w_bytes)
    if budget > fixed:
        tk = max(128, ((budget - fixed) // per_k) // 128 * 128)
    else:
        tk = 128
    return tb, tn, min(tk, _round_up(F, 128))


# ---------------------------------------------------------------------------
# Forward
# ---------------------------------------------------------------------------
def logistic_regression_forward(x, wt_pad, bias_pad, num_classes, *,
                                block_b=None, block_n=None, block_k=None):
    """x: [B, F]; wt_pad: [F, C_pad]; bias_pad: [1, C_pad] (from prepare_params)
    -> logits [B, num_classes] in x.dtype (== nn.Linear(x))."""
    B, F = x.shape
    C_pad = wt_pad.shape[1]
    C = int(num_classes)
    assert wt_pad.shape[0] == F and bias_pad.shape == (1, C_pad) and C <= C_pad

    vmem_limit, vmem_budget = _vmem_limit_and_budget()
    tB, tN, tK = _choose_tiles(B, F, C_pad,
                               jnp.dtype(x.dtype).itemsize,
                               jnp.dtype(wt_pad.dtype).itemsize,
                               vmem_budget)
    if block_b is not None:
        tB = int(block_b)
    if block_n is not None:
        tN = int(block_n)
    if block_k is not None:
        tK = int(block_k)

    nb = -(-B // tB)                    # cdiv; partial last batch block is masked
    nn = -(-C // tN)                    # cdiv over true classes (padding never written)
    out_shape = jax.ShapeDtypeStruct((B, C), x.dtype)

    if tK >= F:
        # Features unsplit: grid over (batch, class) tiles, no accumulator.
        weight_invariant = (nn == 1)
        sb = ({"pipeline_mode": pl.Buffered(1)}
              if weight_invariant and _single_buffering_supported() else {})
        # TODO(synk): if a trace shows the x-tile DMA exposed, bump the x spec
        # to pipeline_mode=pl.Buffered(3) (cheap once the weight is 1-buffered).
        return pl.pallas_call(
            _linear_kernel,
            out_shape=out_shape,
            grid=(nb, nn),
            in_specs=[
                pl.BlockSpec((tB, F), lambda i, j: (i, 0)),
                pl.BlockSpec((F, tN), lambda i, j: (0, j), **sb),
                pl.BlockSpec((1, tN), lambda i, j: (0, j), **sb),
            ],
            out_specs=pl.BlockSpec((tB, tN), lambda i, j: (i, j)),
            compiler_params=pltpu.CompilerParams(
                dimension_semantics=("parallel", "parallel"),
                vmem_limit_bytes=vmem_limit),
        )(x, wt_pad, bias_pad)

    # Feature (K) reduction tiling: zero-pad the contraction dim to a multiple
    # of tK so ragged K blocks cannot contaminate the accumulator.
    F_pad = _round_up(F, tK)
    if F_pad != F:
        # TODO(synk): for production, pick tK | F or hoist this zero-padding
        # into prepare_params so x is not re-padded on every forward.
        x = jnp.pad(x, ((0, 0), (0, F_pad - F)))
        wt_pad = jnp.pad(wt_pad, ((0, F_pad - F), (0, 0)))
    nk = F_pad // tK

    return pl.pallas_call(
        _linear_kernel_ktiled,
        out_shape=out_shape,
        grid=(nb, nn, nk),
        in_specs=[
            pl.BlockSpec((tB, tK), lambda i, j, k: (i, k)),
            pl.BlockSpec((tK, tN), lambda i, j, k: (k, j)),
            pl.BlockSpec((1, tN), lambda i, j, k: (0, j)),
        ],
        out_specs=pl.BlockSpec((tB, tN), lambda i, j, k: (i, j)),
        scratch_shapes=[pltpu.VMEM((tB, tN), jnp.float32)],
        compiler_params=pltpu.CompilerParams(
            dimension_semantics=("parallel", "parallel", "arbitrary"),
            vmem_limit_bytes=vmem_limit),
    )(x, wt_pad, bias_pad)


# ---------------------------------------------------------------------------
# Demo / self-test
# ---------------------------------------------------------------------------
if __name__ == "__main__":
    root = jax.random.PRNGKey(0)
    key_a, key_b = jax.random.split(root)

    def make_problem(key, batch, in_features, num_classes):
        kx, kw, kb = jax.random.split(key, 3)
        bound = 1.0 / (in_features ** 0.5)
        weight = jax.random.uniform(kw, (num_classes, in_features),
                                    jnp.float32, -bound, bound)
        bias = jax.random.uniform(kb, (num_classes,), jnp.float32, -bound, bound)
        x = jax.random.normal(kx, (batch, in_features), jnp.float32)
        return x, weight, bias

    def reference(x, weight, bias):
        return jnp.dot(x, weight.T, precision=jax.lax.Precision.HIGHEST) + bias

    # 1) Module-default small shapes (nn.Linear(32, 10)), f32 fast path:
    #    resident single-buffered weight, unpadded [B, C] output.
    x1, w1, b1 = make_problem(key_a, 8, 32, 10)
    wt1, bp1, _ = prepare_params(w1, b1)
    out1 = jax.block_until_ready(logistic_regression_forward(x1, wt1, bp1, 10))
    assert out1.shape == (8, 10)
    assert jnp.allclose(out1, reference(x1, w1, b1), atol=1e-4, rtol=1e-4)

    # 2) Forced batch/class/feature tiling: exercises the K-reduction kernel,
    #    the ragged last batch tile and the masked narrow-class writeback.
    x2, w2, b2 = make_problem(key_b, 40, 256, 10)
    wt2, bp2, _ = prepare_params(w2, b2)
    out2 = jax.block_until_ready(logistic_regression_forward(
        x2, wt2, bp2, 10, block_b=16, block_n=128, block_k=128))
    assert out2.shape == (40, 10)
    assert jnp.allclose(out2, reference(x2, w2, b2), atol=1e-4, rtol=1e-4)

    # 3) bf16 weight / bf16 MXU operands with f32 accumulation (v6e/v7x lever).
    wt3, bp3, _ = prepare_params(w2, b2, compute_dtype=jnp.bfloat16)
    out3 = jax.block_until_ready(logistic_regression_forward(x2, wt3, bp3, 10))
    assert out3.shape == (40, 10)
    assert jnp.allclose(out3, reference(x2, w2, b2), atol=5e-2, rtol=5e-2)

    print("KERNEL_OK")
</pallas_src>

<mosaic_0001>
module attributes {stable_mosaic.version = 11 : i64} {
  func.func @_copy(%arg0: i32, %arg1: memref<8x128xf32, #tpu.memory_space<vmem>>, %arg2: memref<8x128xf32, #tpu.memory_space<vmem>>) attributes {dimension_semantics = [#tpu.dimension_semantics<arbitrary>], iteration_bounds = array<i64: 2>, scalar_prefetch = 0 : i64, scratch_operands = 0 : i64, tpu.core_type = #tpu.core_type<tc>, window_params = [{pipeline_mode = #tpu.pipeline_mode<synchronous>, transform_indices = @transform_0, window_bounds = array<i64: 8, 128>}, {transform_indices = @transform_1, window_bounds = array<i64: 8, 128>}]} {
    %c0 = arith.constant 0 : index
    %c0_0 = arith.constant 0 : index
    %0 = vector.load %arg1[%c0, %c0_0] : memref<8x128xf32, #tpu.memory_space<vmem>>, vector<8x128xf32>
    %c0_1 = arith.constant 0 : index
    %c0_2 = arith.constant 0 : index
    %1 = vector.load %arg2[%c0_1, %c0_2] : memref<8x128xf32, #tpu.memory_space<vmem>>, vector<8x128xf32>
    tpu.vector_store %arg2[%c0_1, %c0_2], %0 {strides = array<i32>} : memref<8x128xf32, #tpu.memory_space<vmem>>, vector<8x128xf32>,
    return
  }
  func.func @transform_0(%arg0: i32) -> (i32, i32) {
    %c0_i32 = arith.constant 0 : i32
    %c0_i32_0 = arith.constant 0 : i32
    %c0_i32_1 = arith.constant 0 : i32
    return %c0_i32, %c0_i32_0 : i32, i32
  }
  func.func @transform_1(%arg0: i32) -> (i32, i32) {
    %c0_i32 = arith.constant 0 : i32
    %c0_i32_0 = arith.constant 0 : i32
    return %arg0, %c0_i32 : i32, i32
  }
}

module attributes {stable_mosaic.version = 11 : i64} {
  func.func @_linear_kernel(%arg0: i32, %arg1: i32, %arg2: memref<8x32xf32, #tpu.memory_space<vmem>>, %arg3: memref<32x128xf32, #tpu.memory_space<vmem>>, %arg4: memref<1x128xf32, #tpu.memory_space<vmem>>, %arg5: memref<8x128xf32, #tpu.memory_space<vmem>>) attributes {dimension_semantics = [#tpu.dimension_semantics<parallel>, #tpu.dimension_semantics<parallel>], iteration_bounds = array<i64: 1, 1>, scalar_prefetch = 0 : i64, scratch_operands = 0 : i64, tpu.core_type = #tpu.core_type<tc>, window_params = [{transform_indices = @transform_0, window_bounds = array<i64: 8, 32>}, {transform_indices = @transform_1, window_bounds = array<i64: 32, 128>}, {transform_indices = @transform_2, window_bounds = array<i64: 1, 128>}, {transform_indices = @transform_3, window_bounds = array<i64: 8, 128>}]} {
    %c0 = arith.constant 0 : index
    %c0_0 = arith.constant 0 : index
    %0 = vector.load %arg2[%c0, %c0_0] : memref<8x32xf32, #tpu.memory_space<vmem>>, vector<8x32xf32>
    %c0_1 = arith.constant 0 : index
    %c0_2 = arith.constant 0 : index
    %1 = vector.load %arg3[%c0_1, %c0_2] : memref<32x128xf32, #tpu.memory_space<vmem>>, vector<32x128xf32>
    %cst = arith.constant dense<0.000000e+00> : vector<8x128xf32>
    %2 = tpu.matmul %0, %1, %cst {dimension_numbers = #tpu.dot_dimension_numbers<[1], [0], [0], [1], [0, 0, 1, 1], [], []>} : vector<8x32xf32>, vector<32x128xf32>, vector<8x128xf32> -> vector<8x128xf32>
    %c0_3 = arith.constant 0 : index
    %c0_4 = arith.constant 0 : index
    %3 = vector.load %arg4[%c0_3, %c0_4] : memref<1x128xf32, #tpu.memory_space<vmem>>, vector<1x128xf32>
    %4 = vector.broadcast %3 : vector<1x128xf32> to vector<8x128xf32>
    %5 = arith.addf %2, %4 : vector<8x128xf32>
    %c0_5 = arith.constant 0 : index
    %c0_6 = arith.constant 0 : index
    %6 = vector.load %arg5[%c0_5, %c0_6] : memref<8x128xf32, #tpu.memory_space<vmem>>, vector<8x128xf32>
    tpu.vector_store %arg5[%c0_5, %c0_6], %5 {strides = array<i32>} : memref<8x128xf32, #tpu.memory_space<vmem>>, vector<8x128xf32>,
    return
  }
  func.func @transform_0(%arg0: i32, %arg1: i32) -> (i32, i32) {
    %c0_i32 = arith.constant 0 : i32
    %c0_i32_0 = arith.constant 0 : i32
    return %arg0, %c0_i32 : i32, i32
  }
  func.func @transform_1(%arg0: i32, %arg1: i32) -> (i32, i32) {
    %c0_i32 = arith.constant 0 : i32
    %c0_i32_0 = arith.constant 0 : i32
    return %c0_i32, %arg1 : i32, i32
  }
  func.func @transform_2(%arg0: i32, %arg1: i32) -> (i32, i32) {
    %c0_i32 = arith.constant 0 : i32
    %c0_i32_0 = arith.constant 0 : i32
    return %c0_i32, %arg1 : i32, i32
  }
  func.func @transform_3(%arg0: i32, %arg1: i32) -> (i32, i32) {
    %c0_i32 = arith.constant 0 : i32
    return %arg0, %arg1 : i32, i32
  }
}

</mosaic_0001>

<bundles_post_ra>
// kernel: tpu_custom_call.1
= control target key start
LH: loop header
LB: loop body
LE: loop exit
PB: predicated region body
PF: predicated region fallthrough
CT: control target
= control target key end

     0   :  { %6 = vsyncpa [#allocation3], 0  ;;  %s481_s0 = inlined_call_operand.hbm [shape: f32[8,128], index: 0, kind: input, shape index: {}]   ;;  %s482_s1 = inlined_call_operand.hbm [shape: f32[16,128], index: 1, kind: output, shape index: {}]  }
   0x1   :  { %7 = vsyncpa [#allocation4], 0 }
   0x2   :  { %9 = vsyncpa [#allocation4 + $0x1], 0  ;;  %s351_s6 = smov 0   ;;  %s353_s7 = smov 0  }
   0x3   :  { %s355_s8 = smov 0   ;;  %s357_s9 = smov 0  }
   0x4 LB: > { %s372_s10 = sadd.s32 4294967295, %s337_s9   ;;  %s183_s11 = sadd.s32 4294967294, %s337_s9   ;;  %s337_s9 = sphi %s357_s9, %s498_s9   ;;  %s333_s8 = sphi %s355_s8, %s497_s8   ;;  %s329_s7 = sphi %s353_s7, %s496_s7   ;;  %s325_s6 = sphi %s351_s6, %s495_s6  }
   0x5   : > { %s376_s12 = sadd.s32 1, %s337_s9   ;;  %s43_s13 = sadd.s32 1, %s333_s8 }
   0x6   : > { %s40_s14 = ssub.s32 %s337_s9, %s376_s12  ;;  %p53_p0 = scmp.ne.s32.totalorder %s333_s8, %s329_s7 }
   0x7   : > { %p41_p1 = scmp.eq.s32.totalorder %s40_s14, 0  ;;  %p54_p2 = scmp.eq.s32.totalorder %s372_s10, 1 }
   0x8   : > { %p59_p3 = scmp.ne.s32.totalorder %s329_s7, %s325_s6  ;;  %p60_p4 = scmp.eq.s32.totalorder %s183_s11, 1 }
   0x9   : > { %s387_s15 = scalar_select %p41_p1, %s333_s8, %s43_s13  }
   0xa   : > { %p389_p5 = por %p54_p2, %p53_p0  ;;  %p393_p6 = por %p60_p4, %p59_p3 }
   0xb   : > { %p184_p7 = scmp.ge.s32.totalorder %s337_s9, 1  ;;  %p67_p8 = scmp.lt.s32.totalorder %s337_s9, 3 }
   0xc   : > { %s486_s16 = scalar_select %p389_p5, 1, 0 }
   0xd   : > { %s487_s17 = scalar_select %p393_p6, 1, 0 }
   0xe   : > { %p483_p9 = scmp.eq.s32.totalorder %s372_s10, 0  ;;  %p400_p10 = pnand %p184_p7, %p67_p8 }
   0xf   : > { %s339_s19 = smov [#allocation2]   ;;  %s243_s24 = scalar_lea.hbm %s481_s0, 128 }
  0x10   : > { %s488_s18 = scalar_select %p400_p10, 1, 0 }
  0x11   : > { %s80_s20 = sshll.u32 %s339_s19, 4  ;;  %p199_p11 = pneg %p400_p10  ;;  %s81_s20 = int_to_ptr.vmem [resolvable:$true] %s80_s20 }
  0x12   : > { %p244_p13 = scmp.ne.s32.totalorder %s481_s0, %s243_s24  ;;  %p250_p3 = scmp.lt.u32.totalorder %s243_s24, %s481_s0 }
  0x13   : > { %p408_p12 = pnand %p483_p9, %p199_p11 }
  0x15   : > { %p245_p0 = pneg %p408_p12 }
  0x17   : > { %p246_p1 = pnand %p245_p0, %p244_p13 }
  0x19   : > { %p247_p2 = pneg %p246_p1 }
  0x1b   : > { %p252_p4 = pnand %p250_p3, %p247_p2 }
  0x1d   : > { %255 = shalt.err (!%p252_p4)
}
  0x1e   : > { %s256_s29 = scalar_lea.vmem %s81_s20, 128  ;;  %p264_p9 = scmp.lt.s32.totalorder %s81_s20, %s81_s20 }
  0x1f   : > { %p257_p7 = scmp.ne.s32.totalorder %s81_s20, %s256_s29  ;;  %p265_p6 = scmp.lt.s32.totalorder %s256_s29, %s256_s29 }
  0x21   : > { %p259_p8 = pnand %p257_p7, %p245_p0  ;;  %p266_p5 = por %p265_p6, %p264_p9 }
  0x23   : > { %p260_p11 = pneg %p259_p8 }
  0x25   : > { %p267_p10 = pnand %p266_p5, %p260_p11 }
  0x27   : > { %270 = shalt.err (!%p267_p10)
}
  0x28   : > { %202 = dma.hbm_to_vmem [thread:$0]  (!%p408_p12), %s481_s0, 128, %s81_s20, [#allocation3]  }
  0x29   : > { %p490_p13 = scmp.ne.s32.totalorder %s488_s18, 0 }
  0x2a   : > { %p491_p1 = scmp.eq.s32.totalorder (!%p490_p13), %s372_s10, 0 }
  0x2b   : > { %93 = sbr.rel (%p490_p13) target bundleno = 77 (0x4d), region = 24 }
  0x32   : > { %316 = dma.done.wait (%p491_p1), [#allocation3], 128   ;;  %p492_p0 = pmov %p491_p1 }
  0x33   : > { %s105_s3 = sand.u32 1, %s329_s7   ;;  %s190_s13 = sshll.u32 %s372_s10, 7  ;;  %v108_v0 = vld [vmem:[#allocation2] sm:$0xff] }
  0x34   : > { %318 = vsyncadd (%p492_p0), [#allocation3], 4294967168  ;;  %s188_s4 = sshll.u32 %s105_s3, 3  ;;  %s441_s18 = scalar_lea.hbm %s482_s1, %s190_s13 }
  0x35   : > { %s107_s5 = scalar_lea.vmem [#allocation5], %s188_s4  ;;  %s111_s20 = scalar_lea.sflag [#allocation4], %s105_s3 }
  0x36   : > { %s124_s11 = sshll.u32 %s107_s5, 4  ;;  %109 = vst [vmem:[%s107_s5] sm:$0xff] %v108_v0  ;;  %p493_p6 = scmp.ne.s32.totalorder %s486_s16, 0  ;;  %s436_s11 = int_to_ptr.vmem [resolvable:$true] %s124_s11 }
  0x37   : > { %s271_s21 = scalar_lea.vmem %s436_s11, 128  ;;  %s340_s22 = smov [#allocation5]  }
  0x38   : > { %p272_p5 = scmp.ne.s32.totalorder %s436_s11, %s271_s21  ;;  %s275_s10 = sshll.u32 %s340_s22, 4  ;;  %s276_s10 = int_to_ptr.vmem [resolvable:$false] %s275_s10 }
  0x39   : > { %s277_s23 = scalar_lea.vmem %s276_s10, 256  ;;  %p278_p12 = scmp.lt.s32.totalorder %s436_s11, %s276_s10 }
  0x3a   : > { %p273_p9 = pnand %p272_p5, %p493_p6  ;;  %p279_p2 = scmp.lt.s32.totalorder %s277_s23, %s271_s21 }
  0x3c   : > { %p274_p10 = pneg %p273_p9  ;;  %p280_p3 = por %p279_p2, %p278_p12 }
  0x3e   : > { %p281_p4 = pnand %p280_p3, %p274_p10 }
  0x40   : > { %284 = shalt.err (!%p281_p4)
}
  0x41   : > { %s285_s24 = scalar_lea.hbm %s441_s18, 128  ;;  %s289_s27 = scalar_lea.hbm %s482_s1, 256 }
  0x42   : > { %p286_p7 = scmp.ne.s32.totalorder %s441_s18, %s285_s24  ;;  %p290_p13 = scmp.lt.u32.totalorder %s441_s18, %s482_s1 }
  0x43   : > { %p291_p1 = scmp.lt.u32.totalorder %s289_s27, %s285_s24  ;;  %p293_p5 = scmp.lt.u32.totalorder %s285_s24, %s441_s18 }
  0x44   : > { %p287_p8 = pnand %p286_p7, %p493_p6 }
  0x45   : > { %p292_p0 = por %p291_p1, %p290_p13 }
  0x46   : > { %p288_p11 = pneg %p287_p8 }
  0x47   : > { %p294_p9 = por %p293_p5, %p292_p0 }
  0x49   : > { %p295_p10 = pnand %p294_p9, %p288_p11 }
  0x4b   : > { %298 = shalt.err (!%p295_p10)
}
  0x4c   : > { %197 = dma.vmem_to_hbm [thread:$0]  (%p493_p6), %s436_s11, 128, %s441_s18, %s111_s20  }
  0x4d PF: > { %p209_p12 = scmp.ge.s32.totalorder %s337_s9, 2  ;;  %s136_s30 = sand.u32 1, %s325_s6  }
  0x4e   : > { %p494_p2 = scmp.ne.s32.totalorder %s487_s17, 0  ;;  %s137_s2 = scalar_lea.sflag [#allocation4], %s136_s30 }
  0x50   : > { %p204_p3 = pnand %p209_p12, %p494_p2 }
  0x52   : > { %320 = dma.done.wait (!%p204_p3), %s137_s2, 128  }
  0x53   : > { %322 = vsyncadd (!%p204_p3), %s137_s2, 4294967168  ;;  %p12_p4 = scmp.ge.s32.totalorder %s376_s12, 4   ;;  %s495_s6 = smov %s329_s7 }
  0x54   : > { %s496_s7 = smov %s333_s8  ;;  %s497_s8 = smov %s387_s15 }
  0x55   : > { %s498_s9 = smov %s376_s12  ;;  %14 = sbr.rel (!%p12_p4) target bundleno = 4 (0x4), region = 61 }
  0x5c   :  { %142 = vsyncpa [#allocation3], 1 }
  0x5d   :  { %144 = vsyncpa [#allocation3 + $0x1], 1 }
  0x5e   :  { %145 = vsyncpa [#allocation4], 1 }
  0x5f   :  { %147 = vsyncpa [#allocation4 + $0x1], 1 }

// kernel: tpu_custom_call.1
= control target key start
LH: loop header
LB: loop body
LE: loop exit
PB: predicated region body
PF: predicated region fallthrough
CT: control target
= control target key end

     0   :  { %8 = vsyncpa [#allocation3], 0  ;;  %s322_s0 = inlined_call_operand.hbm [shape: f32[8,32], index: 0, kind: input, shape index: {}]   ;;  %s323_s1 = inlined_call_operand.hbm [shape: f32[32,128], index: 1, kind: input, shape index: {}]   ;;  %s324_s2 = inlined_call_operand.vmem [shape: f32[1,128], index: 2, kind: input, shape index: {}]   ;;  %s325_s3 = inlined_call_operand.hbm [shape: f32[8,10], index: 3, kind: output, shape index: {}]  }
   0x1   :  { %9 = vsyncpa [#allocation6], 0 }
   0x2   :  { %10 = vsyncpa [#allocation4], 0  ;;  %s248_s12 = smov [#allocation2]   ;;  %s249_s14 = smov [#allocation5]  }
   0x3   :  { %s17_s13 = sshll.u32 %s248_s12, 4  ;;  %s26_s15 = sshll.u32 %s249_s14, 4  ;;  %s18_s13 = int_to_ptr.vmem [resolvable:$true] %s17_s13  ;;  %s276_s15 = int_to_ptr.vmem [resolvable:$true] %s26_s15 }
   0x4   :  { %s176_s18 = scalar_lea.hbm %s322_s0, 128 }
   0x5   :  { %p177_p0 = scmp.ne.s32.totalorder %s322_s0, %s176_s18  ;;  %p180_p1 = scmp.lt.u32.totalorder %s176_s18, %s322_s0 }
   0x7   :  { %p182_p2 = pnand %p180_p1, %p177_p0 }
   0x9   :  { %185 = shalt.err (!%p182_p2)
}
   0xa   :  { %s186_s23 = scalar_lea.vmem %s18_s13, 128  ;;  %p191_p4 = scmp.lt.s32.totalorder %s18_s13, %s18_s13 }
   0xb   :  { %p187_p3 = scmp.ne.s32.totalorder %s18_s13, %s186_s23  ;;  %p192_p5 = scmp.lt.s32.totalorder %s186_s23, %s186_s23 }
   0xd   :  { %p193_p6 = por %p192_p5, %p191_p4 }
   0xf   :  { %p194_p7 = pnand %p193_p6, %p187_p3 }
  0x11   :  { %197 = shalt.err (!%p194_p7)
}
  0x12   :  { %20 = dma.hbm_to_vmem [thread:$0]  %s322_s0, 128, %s18_s13, [#allocation3]  }
  0x13   :  { %s198_s28 = scalar_lea.hbm %s323_s1, 512 }
  0x14   :  { %p199_p8 = scmp.ne.s32.totalorder %s323_s1, %s198_s28  ;;  %p202_p9 = scmp.lt.u32.totalorder %s198_s28, %s323_s1 }
  0x16   :  { %p204_p10 = pnand %p202_p9, %p199_p8 }
  0x18   :  { %207 = shalt.err (!%p204_p10)
}
  0x19   :  { %s208_s6 = scalar_lea.vmem %s276_s15, 512  ;;  %p213_p12 = scmp.lt.s32.totalorder %s276_s15, %s276_s15 }
  0x1a   :  { %p209_p11 = scmp.ne.s32.totalorder %s276_s15, %s208_s6  ;;  %p214_p13 = scmp.lt.s32.totalorder %s208_s6, %s208_s6 }
  0x1c   :  { %p215_p0 = por %p214_p13, %p213_p12 }
  0x1e   :  { %p216_p1 = pnand %p215_p0, %p209_p11 }
  0x20   :  { %219 = shalt.err (!%p216_p1)
}
  0x21   :  { %s250_s0 = smov 128   ;;  %s251_s7 = smov 8  }
  0x22   :  { %32 = dma.hbm_to_vmem [thread:$0]  %s323_s1, 512, %s276_s15, [#allocation6], %s250_s0, %s250_s0, %s251_s7  }
  0x23   :  { %242 = dma.done.wait [#allocation3], 128  }
  0x24   :  { %243 = vsyncadd [#allocation3], 4294967168 }
  0x25   :  { %244 = dma.done.wait [#allocation6], 512  }
  0x26   :  { %245 = vsyncadd [#allocation6], 4294966784  ;;  %v252_v0 = vmov 0.0|0.0   ;;  %vm253_vm0 = vmmov 0   ;;  %v254_v1 = vmov 0.0   ;;  %v42_v2 = vld [vmem:[#allocation5] sm:$0xff] }
  0x27   :  { %162 = vmatprep.subr.bf16.mxu0 %v252_v0  ;;  %159 = vmatprep.mubr.msk.f32.mxu0 %vm253_vm0, %v254_v1  ;;  %v43_v3 = vld [vmem:[#allocation5 + $0x8] sm:$0xff]  ;;  %v44_v4 = vld [vmem:[#allocation5 + $0x10] sm:$0xff]  ;;  %v45_v6 = vld [vmem:[#allocation5 + $0x18] sm:$0xff]  ;;  %vm53_vm1 = vcmask 261120   ;;  %s255_s11 = smov [#allocation7]  }
  0x28   :  { %v163_v5 = vpack.c.bf16 %v43_v3, %v42_v2  ;;  %v166_v7 = vpack.c.bf16 %v45_v6, %v44_v4  ;;  %v41_v8 = vld [vmem:[#allocation2] sm:$0xff]  ;;  %s134_s12 = sshll.u32 %s255_s11, 4  ;;  %s135_s12 = int_to_ptr.vmem [resolvable:$true] %s134_s12 }
  0x29   :  { %v144_v9 = vld [vmem:[%s324_s2] ss:$0 sm:$0xff]  ;;  %s220_s13 = scalar_lea.vmem %s135_s12, 128  ;;  %p225_p3 = scmp.lt.s32.totalorder %s135_s12, %s135_s12 }
  0x2a   :  { %164 = vmatpush3.bf16.msra.mxu0 %v163_v5  ;;  %p221_p2 = scmp.ne.s32.totalorder %s135_s12, %s220_s13  ;;  %p226_p4 = scmp.lt.s32.totalorder %s220_s13, %s220_s13 }
  0x2b   :  { %165 = vmatprep.subr.bf16.mxu0 %v252_v0 }
  0x2c   :  { %p227_p5 = por %p226_p4, %p225_p3 }
  0x2e   :  { %167 = vmatpush3.bf16.msra.mxu0 %v166_v7  ;;  %p228_p6 = pnand %p227_p5, %p221_p2 }
  0x31   :  { %160 = vmatmul.mubr.msk.f32.vlgmr.msra.gmra.mrb[0].mxu0 %vm53_vm1, %v41_v8 }
 0x104   :  { %v123_v10 = vpop.f32.mrb[0].mxu0 }
 0x105   :  { %v124_v11 = vadd.f32 %v144_v9, %v123_v10  ;;  %v161_v12 = vpop.f32.mrb[1].mxu0 }
 0x107   :  { %127 = vst [vmem:[#allocation7] sm:$0xff] %v124_v11 }
 0x108   :  { %231 = shalt.err (!%p228_p6)
}
 0x109   :  { %s232_s16 = scalar_lea.hbm %s325_s3, 128 }
 0x10a   :  { %p233_p7 = scmp.ne.s32.totalorder %s325_s3, %s232_s16  ;;  %p236_p8 = scmp.lt.u32.totalorder %s232_s16, %s325_s3 }
 0x10c   :  { %p238_p9 = pnand %p236_p8, %p233_p7 }
 0x10e   :  { %241 = shalt.err (!%p238_p9)
}
 0x10f   :  { %137 = dma.vmem_to_hbm [thread:$0]  %s135_s12, 128, %s325_s3, [#allocation4]  }
 0x110   :  { %246 = dma.done.wait [#allocation4], 128  }
 0x111   :  { %247 = vsyncadd [#allocation4], 4294967168 }
 0x112   :  { %141 = vsyncpa [#allocation3], 1 }
 0x113   :  { %142 = vsyncpa [#allocation6], 1 }
 0x114   :  { %143 = vsyncpa [#allocation4], 1 }

</bundles_post_ra>
